<compile_context>
chip_gen: v7x
topology: tpu7x:2x2x1
jax: 0.10.0
libtpu: 0.0.40
codegen_flags: <defaults>
</compile_context>

<pallas_src>
import numpy as np
import jax
import jax.numpy as jnp
from jax.experimental import pallas as pl
from jax.experimental.pallas import tpu as pltpu


def _build_tap_masks(H, W, KH, KW):
    """0/1 validity masks (one per kernel tap) for 'same' zero padding.

    mask[t, h*W + w] == 1 iff input pixel (h + dh, w + dw) for tap t is inside
    the image (PyTorch Conv2d padding_mode='zeros').
    """
    HW = H * W
    hh, ww = np.meshgrid(np.arange(H), np.arange(W), indexing="ij")
    hh = hh.reshape(-1)
    ww = ww.reshape(-1)
    masks = np.zeros((KH * KW, HW), dtype=np.float32)
    t = 0
    for kh in range(KH):
        dh = kh - KH // 2
        for kw in range(KW):
            dw = kw - KW // 2
            valid = ((hh + dh >= 0) & (hh + dh < H) &
                     (ww + dw >= 0) & (ww + dw < W))
            masks[t] = valid.astype(np.float32)
            t += 1
    return masks


def _make_conv_kernel(H, W, KH, KW, NHW):
    """Whole-batch fused conv-as-matmul kernel (single grid step)."""
    pad_h, pad_w = KH // 2, KW // 2

    def kernel(x_ref, w_ref, b_ref, m_ref, o_ref):
        # x_ref: (Cin_pad, NHW)  channels (zero-padded to sublane multiple) x folded batch*HW
        # w_ref: (Cout, K)       K = KH*KW*Cin_pad, columns ordered (kh, kw, ci)
        # b_ref: (Cout, 1)       bias
        # m_ref: (K, NHW)        pre-expanded halo masks (tap row repeated Cin_pad x, tiled over N)
        # o_ref: (Cout, NHW)     lane-dense output slab
        x2 = x_ref[...]

        # Build im2col rows with XLU rolls (co-issue with MXU); every tap is a
        # full 8-sublane block, so the concatenate is alignment-free.
        taps = []
        for kh in range(KH):
            dh = kh - pad_h
            for kw in range(KW):
                dw = kw - pad_w
                shift = (-(dh * W + dw)) % NHW
                taps.append(pltpu.roll(x2, shift, axis=1) if shift else x2)
        patches = jnp.concatenate(taps, axis=0)          # (K, NHW)

        # One fused mask multiply (zeroes halo wrap + cross-image wrap).
        patches = patches * m_ref[...]

        # Single MXU contraction: (Cout, K) @ (K, NHW) -> (Cout, NHW).
        acc = jax.lax.dot_general(
            w_ref[...], patches,
            dimension_numbers=(((1,), (0,)), ((), ())),
            preferred_element_type=jnp.float32)
        acc = acc + b_ref[...]                           # lane-broadcast bias
        o_ref[...] = acc.astype(o_ref.dtype)             # unmasked 512-lane vst

    return kernel


def conv2d_pallas(x_nchw, weight_oihw, bias):
    """Conv2d(stride=1, padding=KH//2, zeros) matching nn.Conv2d (NCHW in/out)."""
    N, Cin, H, W = x_nchw.shape
    Cout, Cin_w, KH, KW = weight_oihw.shape
    assert Cin == Cin_w
    HW = H * W
    NHW = N * HW
    Cin_pad = ((Cin + 7) // 8) * 8                       # sublane-align channels
    K = KH * KW * Cin_pad

    # Fold batch into the lane axis: (Cin_pad, N*HW). Tiny (8 KB) XLA
    # transpose + zero-pad, fused under jit.
    x_cn = jnp.transpose(x_nchw.reshape(N, Cin, HW), (1, 0, 2)).reshape(Cin, NHW)
    x_fold = jnp.pad(x_cn, ((0, Cin_pad - Cin), (0, 0)))

    # Weight as (Cout, K), columns ordered (kh, kw, ci_pad); padded channels
    # contribute zero columns (free on the MXU).
    w_pad = jnp.pad(weight_oihw, ((0, 0), (0, Cin_pad - Cin), (0, 0), (0, 0)))
    w_mat = jnp.transpose(w_pad, (0, 2, 3, 1)).reshape(Cout, K)
    b2 = bias.reshape(Cout, 1)

    # Halo masks pre-expanded on the host at trace time:
    #   (KH*KW, HW) -> repeat each tap row Cin_pad times -> tile over N images.
    m = _build_tap_masks(H, W, KH, KW)                   # (KH*KW, HW)
    m = np.repeat(m, Cin_pad, axis=0)                    # (K, HW)
    m = np.tile(m, (1, N))                               # (K, N*HW)
    masks = jnp.asarray(m)

    out_flat = pl.pallas_call(
        _make_conv_kernel(H, W, KH, KW, NHW),
        out_shape=jax.ShapeDtypeStruct((Cout, NHW), x_nchw.dtype),
        # Whole problem fits trivially in VMEM (~0.3 MB); single kernel step,
        # no grid -> no per-step pipeline overhead on any TPU generation.
        in_specs=[
            pl.BlockSpec(memory_space=pltpu.MemorySpace.VMEM),   # x_fold
            pl.BlockSpec(memory_space=pltpu.MemorySpace.VMEM),   # w_mat
            pl.BlockSpec(memory_space=pltpu.MemorySpace.VMEM),   # bias
            pl.BlockSpec(memory_space=pltpu.MemorySpace.VMEM),   # masks
        ],
        out_specs=pl.BlockSpec(memory_space=pltpu.MemorySpace.VMEM),
    )(x_fold, w_mat, b2, masks)

    # Back to NCHW (tiny XLA transpose, fused under jit).
    return jnp.transpose(out_flat.reshape(Cout, N, H, W), (1, 0, 2, 3))


_conv2d_jit = jax.jit(conv2d_pallas)


class TraceLayer:
    """JAX/Pallas equivalent of the PyTorch TraceLayer wrapping a Conv2d."""

    def __init__(self, weight_oihw, bias):
        self._weight = weight_oihw
        self._bias = bias
        # Cache host copies of the static parameters once (no per-call
        # blocking device_get for weights/bias).
        self._weight_np = np.asarray(jax.device_get(weight_oihw))
        self._bias_np = (np.asarray(jax.device_get(bias))
                         if bias is not None else None)
        self._out_device = None
        self.weight = None
        self.bias = None

    def __call__(self, x_nchw):
        out = _conv2d_jit(x_nchw, self._weight, self._bias)
        # Trace side effects (matching the PyTorch module's forward()), but
        # non-blocking: start the D2H copy now, materialize numpy lazily.
        out.copy_to_host_async()
        self._out_device = out
        self.weight = self._weight_np
        self.bias = self._bias_np
        return out

    @property
    def output(self):
        if self._out_device is None:
            return None
        return np.asarray(self._out_device)


if __name__ == "__main__":
    key = jax.random.PRNGKey(0)
    kx, kw, kb = jax.random.split(key, 3)

    N, Cin, H, W = 2, 4, 16, 16
    Cout, KH, KW = 8, 3, 3

    x = jax.random.normal(kx, (N, Cin, H, W), dtype=jnp.float32)
    # Conv2d-shaped parameters (PyTorch layout: Cout, Cin, KH, KW).
    weight = jax.random.normal(kw, (Cout, Cin, KH, KW), dtype=jnp.float32) * 0.1
    bias = jax.random.normal(kb, (Cout,), dtype=jnp.float32) * 0.1

    layer = TraceLayer(weight, bias)
    out = layer(x)
    out = jax.block_until_ready(out)

    # Reference check against XLA's conv (NCHW, OIHW, stride 1, padding 1).
    ref = jax.lax.conv_general_dilated(
        x, weight, window_strides=(1, 1), padding=((1, 1), (1, 1)),
        dimension_numbers=("NCHW", "OIHW", "NCHW"),
    ) + bias[None, :, None, None]
    ref = jax.block_until_ready(ref)

    assert out.shape == (N, Cout, H, W)
    assert layer.output is not None
    assert layer.weight is not None and layer.bias is not None
    np.testing.assert_allclose(np.asarray(out), np.asarray(ref),
                               rtol=1e-5, atol=1e-5)

    print("KERNEL_OK")
</pallas_src>

<mosaic_0001>
module attributes {stable_mosaic.version = 11 : i64} {
  func.func @kernel(%arg0: memref<8x512xf32, #tpu.memory_space<vmem>>, %arg1: memref<8x72xf32, #tpu.memory_space<vmem>>, %arg2: memref<8x1xf32, #tpu.memory_space<vmem>>, %arg3: memref<72x512xf32, #tpu.memory_space<vmem>>, %arg4: memref<8x512xf32, #tpu.memory_space<vmem>>) attributes {dimension_semantics = [], scalar_prefetch = 0 : i64, scratch_operands = 0 : i64, tpu.core_type = #tpu.core_type<tc>} {
    %c0 = arith.constant 0 : index
    %c0_0 = arith.constant 0 : index
    %0 = vector.load %arg0[%c0, %c0_0] : memref<8x512xf32, #tpu.memory_space<vmem>>, vector<8x512xf32>
    %c17_i32 = arith.constant 17 : i32
    %1 = tpu.dynamic_rotate %0 by %c17_i32 dim 1 : vector<8x512xf32>, i32 -> vector<8x512xf32>
    %c16_i32 = arith.constant 16 : i32
    %2 = tpu.dynamic_rotate %0 by %c16_i32 dim 1 : vector<8x512xf32>, i32 -> vector<8x512xf32>
    %c15_i32 = arith.constant 15 : i32
    %3 = tpu.dynamic_rotate %0 by %c15_i32 dim 1 : vector<8x512xf32>, i32 -> vector<8x512xf32>
    %c1_i32 = arith.constant 1 : i32
    %4 = tpu.dynamic_rotate %0 by %c1_i32 dim 1 : vector<8x512xf32>, i32 -> vector<8x512xf32>
    %c511_i32 = arith.constant 511 : i32
    %5 = tpu.dynamic_rotate %0 by %c511_i32 dim 1 : vector<8x512xf32>, i32 -> vector<8x512xf32>
    %c497_i32 = arith.constant 497 : i32
    %6 = tpu.dynamic_rotate %0 by %c497_i32 dim 1 : vector<8x512xf32>, i32 -> vector<8x512xf32>
    %c496_i32 = arith.constant 496 : i32
    %7 = tpu.dynamic_rotate %0 by %c496_i32 dim 1 : vector<8x512xf32>, i32 -> vector<8x512xf32>
    %c495_i32 = arith.constant 495 : i32
    %8 = tpu.dynamic_rotate %0 by %c495_i32 dim 1 : vector<8x512xf32>, i32 -> vector<8x512xf32>
    %9 = tpu.concatenate %1, %2, %3, %4, %0, %5, %6, %7, %8 in 0 : vector<8x512xf32>, vector<8x512xf32>, vector<8x512xf32>, vector<8x512xf32>, vector<8x512xf32>, vector<8x512xf32>, vector<8x512xf32>, vector<8x512xf32>, vector<8x512xf32> -> vector<72x512xf32>
    %c0_1 = arith.constant 0 : index
    %c0_2 = arith.constant 0 : index
    %10 = vector.load %arg3[%c0_1, %c0_2] : memref<72x512xf32, #tpu.memory_space<vmem>>, vector<72x512xf32>
    %11 = arith.mulf %9, %10 : vector<72x512xf32>
    %c0_3 = arith.constant 0 : index
    %c0_4 = arith.constant 0 : index
    %12 = vector.load %arg1[%c0_3, %c0_4] : memref<8x72xf32, #tpu.memory_space<vmem>>, vector<8x72xf32>
    %cst = arith.constant dense<0.000000e+00> : vector<8x512xf32>
    %13 = tpu.matmul %12, %11, %cst {dimension_numbers = #tpu.dot_dimension_numbers<[1], [0], [0], [1], [0, 0, 1, 1], [], []>} : vector<8x72xf32>, vector<72x512xf32>, vector<8x512xf32> -> vector<8x512xf32>
    %c0_5 = arith.constant 0 : index
    %c0_6 = arith.constant 0 : index
    %14 = vector.load %arg2[%c0_5, %c0_6] : memref<8x1xf32, #tpu.memory_space<vmem>>, vector<8x1xf32>
    %15 = vector.broadcast %14 : vector<8x1xf32> to vector<8x512xf32>
    %16 = arith.addf %13, %15 : vector<8x512xf32>
    %c0_7 = arith.constant 0 : index
    %c0_8 = arith.constant 0 : index
    %17 = vector.load %arg4[%c0_7, %c0_8] : memref<8x512xf32, #tpu.memory_space<vmem>>, vector<8x512xf32>
    tpu.vector_store %arg4[%c0_7, %c0_8], %16 {strides = array<i32>} : memref<8x512xf32, #tpu.memory_space<vmem>>, vector<8x512xf32>,
    return
  }
}

</mosaic_0001>

<bundles_post_ra>
// kernel: conv2d_pallas.1
= control target key start
LH: loop header
LB: loop body
LE: loop exit
PB: predicated region body
PF: predicated region fallthrough
CT: control target
= control target key end

     0   :  { %s405_s19 = smov 17   ;;  %s406_s24 = smov 16   ;;  %v412_v4 = vmov 0.0   ;;  %v413_v5 = vmov 0   ;;  %v29_v7 = vlaneseq  ;;  %vm206_vm8 = vcmask 588800   ;;  %s688_s0 = inlined_call_operand.vmem [shape: f32[8,512], index: 0, kind: input, shape index: {}]   ;;  %s689_s2 = inlined_call_operand.vmem [shape: f32[8,1], index: 2, kind: input, shape index: {}]   ;;  %s690_s3 = inlined_call_operand.vmem [shape: f32[72,512], index: 3, kind: input, shape index: {}]   ;;  %s691_s1 = inlined_call_operand.vmem [shape: f32[8,72], index: 1, kind: input, shape index: {}]   ;;  %s692_s4 = inlined_call_operand.vmem [shape: f32[8,512], index: 4, kind: output, shape index: {}]  }
   0x1   :  { %v443_v0 = vld [vmem:[%s688_s0 + $0x10] sm:$0xff]  ;;  %v448_v1 = vld [vmem:[%s688_s0] sm:$0xff]  ;;  %v455_v2 = vld [vmem:[%s688_s0 + $0x18] sm:$0xff]  ;;  %s407_s25 = smov 15   ;;  %s409_s26 = smov 127   ;;  %274 = vmatprep.mubr.f32.mxu0 %v412_v4  ;;  %345 = vmatprep.mubr.f32.mxu1 %v412_v4 }
   0x2   :  { %25 = vrot.lane.b32.xlu1 %v443_v0, %s405_s19  ;;  %21 = vrot.lane.b32.xlu0 %v448_v1, %s405_s19  ;;  %v460_v3 = vld [vmem:[%s688_s0 + $0x8] sm:$0xff]  ;;  %s408_s0 = smov 1   ;;  %s410_s27 = smov 113   ;;  %v200_v6 = vld [vmem:[%s689_s2] sm:$0xff]  ;;  %v495_v10 = vand.u32 127, %v29_v7 }
   0x3   :  { %s411_s28 = smov 112   ;;  %404 = vset.pattern.permute.xlu0 %v413_v5  ;;  %s414_s29 = smov 111   ;;  %v128_v14 = vld [vmem:[%s690_s3 + $0x8] sm:$0xff]  ;;  %v127_v18 = vld [vmem:[%s690_s3] sm:$0xff]  ;;  %v129_v21 = vld [vmem:[%s690_s3 + $0x10] sm:$0xff] }
   0x4   :  { %vm31_vm0 = vcmp.lt.s32.totalorder %v495_v10, 17  ;;  %vm44_vm1 = vcmp.lt.s32.totalorder %v495_v10, 16  ;;  %v132_v15 = vld [vmem:[%s690_s3 + $0x28] sm:$0xff]  ;;  %v131_v23 = vld [vmem:[%s690_s3 + $0x20] sm:$0xff]  ;;  %v133_v27 = vld [vmem:[%s690_s3 + $0x30] sm:$0xff]  ;;  %vm57_vm2 = vcmp.lt.s32.totalorder %v495_v10, 15 }
   0x5   :  { %v130_v28 = vld [vmem:[%s690_s3 + $0x18] sm:$0xff]  ;;  %vm70_vm3 = vcmp.lt.s32.totalorder %v495_v10, 1  ;;  %v136_v49 = vld [vmem:[%s690_s3 + $0x48] sm:$0xff]  ;;  %v135_v54 = vld [vmem:[%s690_s3 + $0x40] sm:$0xff]  ;;  %vm83_vm4 = vcmp.lt.s32.totalorder %v495_v10, 127  ;;  %vm109_vm5 = vcmp.lt.s32.totalorder %v495_v10, 112 }
   0x6   :  { %27 = vrot.lane.b32.xlu1 %v455_v2, %s405_s19  ;;  %23 = vrot.lane.b32.xlu0 %v460_v3, %s405_s19  ;;  %v134_v29 = vld [vmem:[%s690_s3 + $0x38] sm:$0xff]  ;;  %v140_v51 = vld [vmem:[%s690_s3 + $0x68] sm:$0xff]  ;;  %vm96_vm6 = vcmp.lt.s32.totalorder %v495_v10, 113  ;;  %vm122_vm7 = vcmp.lt.s32.totalorder %v495_v10, 111 }
   0x7   :  { %v137_v58 = vld [vmem:[%s690_s3 + $0x50] sm:$0xff]  ;;  %v138_v59 = vld [vmem:[%s690_s3 + $0x58] sm:$0xff]  ;;  %v139_v63 = vld [vmem:[%s690_s3 + $0x60] sm:$0xff] }
   0x8   :  { %v141_v4 = vld [vmem:[%s690_s3 + $0x70] sm:$0xff]  ;;  %v142_v5 = vld [vmem:[%s690_s3 + $0x78] sm:$0xff] }
   0xa   :  { %38 = vrot.lane.b32.xlu1 %v460_v3, %s406_s24  ;;  %36 = vrot.lane.b32.xlu0 %v448_v1, %s406_s24 }
   0xe   :  { %42 = vrot.lane.b32.xlu1 %v455_v2, %s406_s24  ;;  %40 = vrot.lane.b32.xlu0 %v443_v0, %s406_s24 }
  0x12   :  { %51 = vrot.lane.b32.xlu1 %v460_v3, %s407_s25  ;;  %49 = vrot.lane.b32.xlu0 %v448_v1, %s407_s25 }
  0x16   :  { %55 = vrot.lane.b32.xlu1 %v455_v2, %s407_s25  ;;  %53 = vrot.lane.b32.xlu0 %v443_v0, %s407_s25 }
  0x1a   :  { %64 = vrot.lane.b32.xlu1 %v460_v3, %s408_s0  ;;  %62 = vrot.lane.b32.xlu0 %v448_v1, %s408_s0 }
  0x1e   :  { %68 = vrot.lane.b32.xlu1 %v455_v2, %s408_s0  ;;  %66 = vrot.lane.b32.xlu0 %v443_v0, %s408_s0 }
  0x22   :  { %77 = vrot.lane.b32.xlu1 %v460_v3, %s409_s26  ;;  %75 = vrot.lane.b32.xlu0 %v448_v1, %s409_s26 }
  0x26   :  { %81 = vrot.lane.b32.xlu1 %v455_v2, %s409_s26  ;;  %79 = vrot.lane.b32.xlu0 %v443_v0, %s409_s26 }
  0x2a   :  { %90 = vrot.lane.b32.xlu1 %v460_v3, %s410_s27  ;;  %88 = vrot.lane.b32.xlu0 %v448_v1, %s410_s27 }
  0x2e   :  { %94 = vrot.lane.b32.xlu1 %v455_v2, %s410_s27  ;;  %92 = vrot.lane.b32.xlu0 %v443_v0, %s410_s27 }
  0x32   :  { %103 = vrot.lane.b32.xlu1 %v460_v3, %s411_s28  ;;  %101 = vrot.lane.b32.xlu0 %v448_v1, %s411_s28 }
  0x36   :  { %107 = vrot.lane.b32.xlu1 %v455_v2, %s411_s28  ;;  %105 = vrot.lane.b32.xlu0 %v443_v0, %s411_s28 }
  0x3a   :  { %116 = vrot.lane.b32.xlu1 %v460_v3, %s414_s29  ;;  %114 = vrot.lane.b32.xlu0 %v448_v1, %s414_s29 }
  0x3e   :  { %120 = vrot.lane.b32.xlu1 %v455_v2, %s414_s29  ;;  %118 = vrot.lane.b32.xlu0 %v443_v0, %s414_s29 }
  0x42   :  { %203 = vperm.xlu0 %404, %v200_v6  }
  0x74   :  { %v26_v8 = vpop.permute.xlu1 %25  ;;  %v22_v9 = vpop.permute.xlu0 %21 }
  0x78   :  { %v28_v11 = vpop.permute.xlu1 %27  ;;  %v24_v12 = vpop.permute.xlu0 %23 }
  0x79   :  { %v34_v13 = vsel %vm31_vm0, %v22_v9, %v24_v12  ;;  %v35_v19 = vsel %vm31_vm0, %v28_v11, %v22_v9  ;;  %v33_v22 = vsel %vm31_vm0, %v24_v12, %v26_v8  ;;  %v32_v26 = vsel %vm31_vm0, %v26_v8, %v28_v11 }
  0x7a   :  { %v164_v24 = vmul.f32 %v128_v14, %v34_v13  ;;  %v163_v30 = vmul.f32 %v127_v18, %v35_v19  ;;  %v165_v34 = vmul.f32 %v129_v21, %v33_v22  ;;  %v166_v40 = vmul.f32 %v130_v28, %v32_v26  ;;  %v146_v26 = vld [vmem:[%s690_s3 + $0x98] sm:$0xff]  ;;  %v147_v28 = vld [vmem:[%s690_s3 + $0xa0] sm:$0xff] }
  0x7c   :  { %v39_v16 = vpop.permute.xlu1 %38  ;;  %v37_v17 = vpop.permute.xlu0 %36 }
  0x7d   :  { %v47_v20 = vsel %vm44_vm1, %v37_v17, %v39_v16 }
  0x7e   :  { %v168_v25 = vmul.f32 %v132_v15, %v47_v20 }
  0x80   :  { %v43_v31 = vpop.permute.xlu1 %42  ;;  %v41_v32 = vpop.permute.xlu0 %40  ;;  %v362_v33 = vpack.c.bf16 %v168_v25, %v164_v24  ;;  %v143_v24 = vld [vmem:[%s690_s3 + $0x80] sm:$0xff]  ;;  %v144_v25 = vld [vmem:[%s690_s3 + $0x88] sm:$0xff] }
  0x81   :  { %v48_v35 = vsel %vm44_vm1, %v43_v31, %v37_v17  ;;  %v45_v36 = vsel %vm44_vm1, %v41_v32, %v43_v31  ;;  %v46_v37 = vsel %vm44_vm1, %v39_v16, %v41_v32  ;;  %v148_v31 = vld [vmem:[%s690_s3 + $0xa8] sm:$0xff]  ;;  %v149_v32 = vld [vmem:[%s690_s3 + $0xb0] sm:$0xff] }
  0x82   :  { %v167_v38 = vmul.f32 %v131_v23, %v48_v35  ;;  %v169_v39 = vmul.f32 %v133_v27, %v46_v37  ;;  %363 = vmatprep.subr.bf16.mxu0 %v362_v33  ;;  %v170_v41 = vmul.f32 %v134_v29, %v45_v36  ;;  %v145_v27 = vld [vmem:[%s690_s3 + $0x90] sm:$0xff]  ;;  %v180_v35 = vmul.f32 %v144_v25, %v460_v3  ;;  %v162_v25 = vld [vmem:[%s690_s3 + $0x118] sm:$0xff] }
  0x83   :  { %v182_v36 = vmul.f32 %v146_v26, %v455_v2  ;;  %v179_v37 = vmul.f32 %v143_v24, %v448_v1  ;;  %v160_v26 = vld [vmem:[%s690_s3 + $0x108] sm:$0xff] }
  0x84   :  { %v52_v42 = vpop.permute.xlu1 %51  ;;  %v50_v43 = vpop.permute.xlu0 %49  ;;  %v364_v44 = vpack.c.bf16 %v167_v38, %v163_v30  ;;  %v378_v45 = vpack.c.bf16 %v170_v41, %v166_v40  ;;  %v380_v46 = vpack.c.bf16 %v169_v39, %v165_v34  ;;  %v150_v30 = vld [vmem:[%s690_s3 + $0xb8] sm:$0xff]  ;;  %v181_v38 = vmul.f32 %v145_v27, %v443_v0  ;;  %v161_v27 = vld [vmem:[%s690_s3 + $0x110] sm:$0xff] }
  0x85   :  { %v60_v50 = vsel %vm57_vm2, %v50_v43, %v52_v42 }
  0x86   :  { %365 = vmatpush1.bf16.msra.mxu0 %v364_v44  ;;  %379 = vmatprep.subr.bf16.mxu1 %v378_v45  ;;  %v172_v57 = vmul.f32 %v136_v49, %v60_v50 }
  0x87   :  { %381 = vmatpush1.bf16.msra.mxu1 %v380_v46 }
  0x88   :  { %v56_v47 = vpop.permute.xlu1 %55  ;;  %v54_v48 = vpop.permute.xlu0 %53 }
  0x89   :  { %v61_v55 = vsel %vm57_vm2, %v56_v47, %v50_v43  ;;  %v59_v60 = vsel %vm57_vm2, %v52_v42, %v54_v48  ;;  %v58_v62 = vsel %vm57_vm2, %v54_v48, %v56_v47 }
  0x8a   :  { %v171_v6 = vmul.f32 %v135_v54, %v61_v55  ;;  %v173_v11 = vmul.f32 %v137_v58, %v59_v60  ;;  %v174_v15 = vmul.f32 %v138_v59, %v58_v62  ;;  %v152_v54 = vld [vmem:[%s690_s3 + $0xc8] sm:$0xff]  ;;  %v158_v60 = vld [vmem:[%s690_s3 + $0xf8] sm:$0xff]  ;;  %v157_v62 = vld [vmem:[%s690_s3 + $0xf0] sm:$0xff] }
  0x8c   :  { %v65_v52 = vpop.permute.xlu1 %64  ;;  %v63_v53 = vpop.permute.xlu0 %62 }
  0x8d   :  { %v73_v56 = vsel %vm70_vm3, %v63_v53, %v65_v52 }
  0x8e   :  { %v176_v61 = vmul.f32 %v140_v51, %v73_v56  ;;  %v153_v56 = vld [vmem:[%s690_s3 + $0xd0] sm:$0xff] }
  0x90   :  { %v69_v7 = vpop.permute.xlu1 %68  ;;  %v67_v8 = vpop.permute.xlu0 %66  ;;  %v366_v9 = vpack.c.bf16 %v176_v61, %v172_v57  ;;  %v155_v57 = vld [vmem:[%s690_s3 + $0xe0] sm:$0xff]  ;;  %v156_v61 = vld [vmem:[%s690_s3 + $0xe8] sm:$0xff] }
  0x91   :  { %v74_v12 = vsel %vm70_vm3, %v69_v7, %v63_v53  ;;  %v71_v13 = vsel %vm70_vm3, %v67_v8, %v69_v7  ;;  %v72_v14 = vsel %vm70_vm3, %v65_v52, %v67_v8  ;;  %v154_v52 = vld [vmem:[%s690_s3 + $0xd8] sm:$0xff] }
  0x92   :  { %v175_v16 = vmul.f32 %v139_v63, %v74_v12  ;;  %v177_v17 = vmul.f32 %v141_v4, %v72_v14  ;;  %v178_v18 = vmul.f32 %v142_v5, %v71_v13  ;;  %367 = vmatprep.subr.bf16.mxu0 %v366_v9  ;;  %v151_v63 = vld [vmem:[%s690_s3 + $0xc0] sm:$0xff] }
  0x94   :  { %v78_v19 = vpop.permute.xlu1 %77  ;;  %v76_v20 = vpop.permute.xlu0 %75  ;;  %v368_v21 = vpack.c.bf16 %v175_v16, %v171_v6  ;;  %v382_v22 = vpack.c.bf16 %v178_v18, %v174_v15  ;;  %v384_v23 = vpack.c.bf16 %v177_v17, %v173_v11 }
  0x95   :  { %v86_v29 = vsel %vm83_vm4, %v76_v20, %v78_v19 }
  0x96   :  { %369 = vmatpush1.bf16.msra.mxu0 %v368_v21  ;;  %383 = vmatprep.subr.bf16.mxu1 %v382_v22  ;;  %v183_v39 = vmul.f32 %v147_v28, %v86_v29  ;;  %v159_v28 = vld [vmem:[%s690_s3 + $0x100] sm:$0xff] }
  0x97   :  { %385 = vmatpush1.bf16.msra.mxu1 %v384_v23 }
  0x98   :  { %v82_v33 = vpop.permute.xlu1 %81  ;;  %v80_v34 = vpop.permute.xlu0 %79  ;;  %v372_v48 = vpack.c.bf16 %v183_v39, %v179_v37  ;;  %v199_v39 = vld [vmem:[%s691_s1] sm:$0xff] }
  0x99   :  { %v87_v40 = vsel %vm83_vm4, %v82_v33, %v76_v20  ;;  %v84_v41 = vsel %vm83_vm4, %v80_v34, %v82_v33  ;;  %v85_v42 = vsel %vm83_vm4, %v78_v19, %v80_v34 }
  0x9a   :  { %v186_v43 = vmul.f32 %v150_v30, %v87_v40  ;;  %v184_v44 = vmul.f32 %v148_v31, %v85_v42  ;;  %v185_v45 = vmul.f32 %v149_v32, %v84_v41 }
  0x9c   :  { %v91_v3 = vpop.permute.xlu1 %90  ;;  %v89_v46 = vpop.permute.xlu0 %88  ;;  %v370_v2 = vpack.c.bf16 %v184_v44, %v180_v35  ;;  %v386_v47 = vpack.c.bf16 %v186_v43, %v182_v36  ;;  %v388_v1 = vpack.c.bf16 %v185_v45, %v181_v38 }
  0x9d   :  { %v99_v4 = vsel %vm96_vm6, %v89_v46, %v91_v3 }
  0x9e   :  { %371 = vmatprep.subr.bf16.mxu0 %v370_v2  ;;  %387 = vmatprep.subr.bf16.mxu1 %v386_v47  ;;  %v187_v18 = vmul.f32 %v151_v63, %v99_v4 }
  0x9f   :  { %373 = vmatpush1.bf16.msra.mxu0 %v372_v48  ;;  %389 = vmatpush1.bf16.msra.mxu1 %v388_v1 }
  0xa0   :  { %v95_v0 = vpop.permute.xlu1 %94  ;;  %v93_v49 = vpop.permute.xlu0 %92 }
  0xa1   :  { %v100_v53 = vsel %vm96_vm6, %v95_v0, %v89_v46  ;;  %v98_v55 = vsel %vm96_vm6, %v91_v3, %v93_v49  ;;  %v97_v59 = vsel %vm96_vm6, %v93_v49, %v95_v0 }
  0xa2   :  { %v190_v5 = vmul.f32 %v154_v52, %v100_v53  ;;  %v188_v6 = vmul.f32 %v152_v54, %v98_v55  ;;  %v189_v14 = vmul.f32 %v153_v56, %v97_v59 }
  0xa4   :  { %v104_v50 = vpop.permute.xlu1 %103  ;;  %v102_v51 = vpop.permute.xlu0 %101 }
  0xa5   :  { %v112_v58 = vsel %vm109_vm5, %v102_v51, %v104_v50 }
  0xa6   :  { %v191_v9 = vmul.f32 %v155_v57, %v112_v58 }
  0xa8   :  { %v108_v7 = vpop.permute.xlu1 %107  ;;  %v106_v8 = vpop.permute.xlu0 %105  ;;  %v376_v24 = vpack.c.bf16 %v191_v9, %v187_v18 }
  0xa9   :  { %v113_v11 = vsel %vm109_vm5, %v108_v7, %v102_v51  ;;  %v110_v12 = vsel %vm109_vm5, %v106_v8, %v108_v7  ;;  %v111_v13 = vsel %vm109_vm5, %v104_v50, %v106_v8 }
  0xaa   :  { %v194_v15 = vmul.f32 %v158_v60, %v113_v11  ;;  %v192_v16 = vmul.f32 %v156_v61, %v111_v13  ;;  %v193_v17 = vmul.f32 %v157_v62, %v110_v12 }
  0xac   :  { %v117_v19 = vpop.permute.xlu1 %116  ;;  %v115_v20 = vpop.permute.xlu0 %114  ;;  %v374_v21 = vpack.c.bf16 %v192_v16, %v188_v6  ;;  %v390_v22 = vpack.c.bf16 %v194_v15, %v190_v5  ;;  %v392_v23 = vpack.c.bf16 %v193_v17, %v189_v14 }
  0xad   :  { %v125_v29 = vsel %vm122_vm7, %v115_v20, %v117_v19 }
  0xae   :  { %375 = vmatprep.subr.bf16.mxu0 %v374_v21  ;;  %391 = vmatprep.subr.bf16.mxu1 %v390_v22  ;;  %v195_v38 = vmul.f32 %v159_v28, %v125_v29 }
  0xaf   :  { %377 = vmatpush1.bf16.msra.mxu0 %v376_v24  ;;  %393 = vmatpush1.bf16.msra.mxu1 %v392_v23 }
  0xb0   :  { %v121_v30 = vpop.permute.xlu1 %120  ;;  %v119_v31 = vpop.permute.xlu0 %118 }
  0xb1   :  { %v126_v32 = vsel %vm122_vm7, %v121_v30, %v115_v20  ;;  %v123_v33 = vsel %vm122_vm7, %v119_v31, %v121_v30  ;;  %v124_v34 = vsel %vm122_vm7, %v117_v19, %v119_v31 }
  0xb2   :  { %v198_v35 = vmul.f32 %v162_v25, %v126_v32  ;;  %v196_v36 = vmul.f32 %v160_v26, %v124_v34  ;;  %v197_v37 = vmul.f32 %v161_v27, %v123_v33 }
  0xb4   :  { %226 = vmatprep.subr.mxu0 %v196_v36  ;;  %297 = vmatprep.subr.mxu1 %v198_v35 }
  0xb5   :  { %227 = vmatpush1.msra.mxu0 %v195_v38  ;;  %298 = vmatpush1.msra.mxu1 %v197_v37 }
  0xb6   :  { %360 = vmatmul.mubr.msk.f32.vlgmr.msra.gmra.mrb[0].mxu0 %vm206_vm8, %v199_v39  ;;  %361 = vmatmul.mubr.msk.f32.vlgmr.msra.gmra.mrb[0].mxu1 %vm206_vm8, %v199_v39 }
  0xc1   :  { %v204_v40 = vpop.permute.xlu0 %203 }
 0x189   :  { %v347_v41 = vpop.f32.mrb[0].mxu1  ;;  %v276_v42 = vpop.f32.mrb[0].mxu0 }
 0x18a   :  { %v348_v10 = vadd.f32 %v347_v41, %v204_v40  ;;  %v277_v43 = vadd.f32 %v276_v42, %v204_v40  ;;  %v278_v44 = vpop.f32.mrb[1].mxu0  ;;  %v349_v45 = vpop.f32.mrb[1].mxu1 }
 0x18b   :  { %v279_v3 = vadd.f32 %v278_v44, %v204_v40  ;;  %v350_v46 = vadd.f32 %v349_v45, %v204_v40 }
 0x18c   :  { %354 = vst [vmem:[%s692_s4 + $0x10] sm:$0xff] %v348_v10  ;;  %352 = vst [vmem:[%s692_s4] sm:$0xff] %v277_v43 }
 0x18d   :  { %353 = vst [vmem:[%s692_s4 + $0x8] sm:$0xff] %v279_v3  ;;  %355 = vst [vmem:[%s692_s4 + $0x18] sm:$0xff] %v350_v46 }

</bundles_post_ra>
